<compile_context>
chip_gen: v6e
topology: v6e:2x2x1
jax: 0.10.0
libtpu: 0.0.40
codegen_flags: <defaults>
</compile_context>

<pallas_src>
import functools

import jax
import jax.numpy as jnp
from jax.experimental import pallas as pl
from jax.experimental.pallas import tpu as pltpu


_TILE_CANDIDATES = (2048, 1024, 512, 256, 128)
_VMEM_CAP_BYTES = 48 * 2**20          # stay well under v7x's 64 MiB physical VMEM
_VMEM_FLOOR_BYTES = 32 * 2**20
_RESIDENT_X_MAX_BYTES = 8 * 2**20     # keep y_rel VMEM-resident up to this size


def _round_up(x, m):
    return ((x + m - 1) // m) * m


def _cap_vmem(need_bytes):
    # 2x headroom for compiler-internal scratch, capped for v7x.
    return int(min(max(2 * need_bytes, _VMEM_FLOOR_BYTES), _VMEM_CAP_BYTES))


def _choose_tiles(n, max_tile=2048, min_dst_tiles=4):
    """Pick (n_pad, tm, tk).  tk (src/reduction tile) is as large as possible to
    amortize per-grid-step overhead; tm (dst tile) keeps >= min_dst_tiles tiles on
    the parallel grid axis so both v7x TensorCores get work."""
    n_pad = _round_up(max(n, 1), 128)
    tk = max(t for t in _TILE_CANDIDATES if t <= min(max_tile, n_pad))
    n_pad = _round_up(n_pad, tk)
    candidates = [t for t in _TILE_CANDIDATES if t <= tk]   # all divide n_pad
    tm = next((t for t in candidates if n_pad // t >= min_dst_tiles),
              candidates[-1])
    return n_pad, tm, tk


# ---------------------------------------------------------------------------
# Kernel 1: per-layer feature transform  y_rel = X @ W_rel,  y_self = X @ W_root + b
# ---------------------------------------------------------------------------
def feature_transform_kernel(x_ref, w_rel_ref, w_root_ref, b_ref,
                             y_rel_ref, y_self_ref):
    x = x_ref[...]                                               # [tm, Fp_in] bf16
    y_rel = jnp.dot(x, w_rel_ref[...], preferred_element_type=jnp.float32)
    y_rel_ref[...] = y_rel.astype(y_rel_ref.dtype)
    y_self = jnp.dot(x, w_root_ref[...], preferred_element_type=jnp.float32)
    y_self_ref[...] = (y_self + b_ref[...]).astype(y_self_ref.dtype)


def feature_transform(x, w_rel, w_root, b, *, tm):
    n_pad, fp_in = x.shape
    fp_out = w_rel.shape[1]
    need = (2 * tm * fp_in * 2 + 2 * fp_in * fp_out * 2 + fp_out * 4
            + 2 * tm * fp_out * 2 + 2 * tm * fp_out * 4)
    return pl.pallas_call(
        feature_transform_kernel,
        out_shape=(jax.ShapeDtypeStruct((n_pad, fp_out), jnp.bfloat16),
                   jax.ShapeDtypeStruct((n_pad, fp_out), jnp.float32)),
        grid_spec=pltpu.PrefetchScalarGridSpec(
            num_scalar_prefetch=0,
            grid=(n_pad // tm,),
            in_specs=[
                pl.BlockSpec((tm, fp_in), lambda i: (i, 0)),        # X rows
                pl.BlockSpec((fp_in, fp_out), lambda i: (0, 0)),    # W_rel (resident)
                pl.BlockSpec((fp_in, fp_out), lambda i: (0, 0)),    # W_root (resident)
                pl.BlockSpec((1, fp_out), lambda i: (0, 0)),        # bias (resident)
            ],
            out_specs=(pl.BlockSpec((tm, fp_out), lambda i: (i, 0)),
                       pl.BlockSpec((tm, fp_out), lambda i: (i, 0))),
        ),
        compiler_params=pltpu.CompilerParams(
            dimension_semantics=("parallel",),
            vmem_limit_bytes=_cap_vmem(need)),
    )(x, w_rel, w_root, b)


# ---------------------------------------------------------------------------
# Kernel 2: aggregation  out = relu?(A @ y_rel + y_self), tiled over (dst, src)
# ---------------------------------------------------------------------------
def aggregate_kernel(adj_ref, y_rel_ref, y_self_ref, o_ref, acc_ref, *,
                     tk, apply_relu, x_resident):
    k = pl.program_id(1)

    @pl.when(k == 0)
    def _init():
        acc_ref[...] = jnp.zeros_like(acc_ref)

    # int8 adjacency tile -> bf16 on the VPU (kernel is DMA-bound; the upcast rides
    # in VALU slack), then bf16 MXU matmul with f32 accumulation.
    a = adj_ref[...].astype(jnp.bfloat16)
    if x_resident:
        start = pl.multiple_of(k * tk, tk)
        y = y_rel_ref[pl.ds(start, tk), :]
    else:
        y = y_rel_ref[...]
    acc_ref[...] += jnp.dot(a, y, preferred_element_type=jnp.float32)

    @pl.when(k == pl.num_programs(1) - 1)
    def _finalize():
        out = acc_ref[...] + y_self_ref[...]
        if apply_relu:
            out = jnp.maximum(out, 0.0)
        o_ref[...] = out.astype(o_ref.dtype)


def aggregate(adj, y_rel, y_self, *, apply_relu, out_dtype, tm, tk):
    n_pad = adj.shape[0]
    fp_out = y_rel.shape[1]
    out_itemsize = jnp.dtype(out_dtype).itemsize
    x_resident = n_pad * fp_out * 2 <= _RESIDENT_X_MAX_BYTES

    if x_resident:
        # Whole y_rel resident in VMEM: constant block index -> DMA'd once.
        y_rel_spec = pl.BlockSpec((n_pad, fp_out), lambda i, k: (0, 0))
        y_rel_bytes = n_pad * fp_out * 2
    else:
        y_rel_spec = pl.BlockSpec((tk, fp_out), lambda i, k: (k, 0))
        y_rel_bytes = 2 * tk * fp_out * 2

    need = (2 * tm * tk * 1                     # int8 A tile, double-buffered
            + y_rel_bytes
            + 2 * tm * fp_out * 4               # y_self tile (f32), double-buffered
            + 2 * tm * fp_out * out_itemsize    # output tile, double-buffered
            + tm * fp_out * 4)                  # accumulator
    kernel = functools.partial(aggregate_kernel, tk=tk, apply_relu=apply_relu,
                               x_resident=x_resident)
    bytes_accessed = (n_pad * n_pad * 1
                      + n_pad * fp_out * (2 + 4 + out_itemsize))
    return pl.pallas_call(
        kernel,
        out_shape=jax.ShapeDtypeStruct((n_pad, fp_out), out_dtype),
        grid_spec=pltpu.PrefetchScalarGridSpec(
            num_scalar_prefetch=0,
            grid=(n_pad // tm, n_pad // tk),
            in_specs=[
                pl.BlockSpec((tm, tk), lambda i, k: (i, k)),       # A[dst, src] int8
                y_rel_spec,                                        # X @ W_rel (bf16)
                pl.BlockSpec((tm, fp_out), lambda i, k: (i, 0)),   # X @ W_root + b
            ],
            out_specs=pl.BlockSpec((tm, fp_out), lambda i, k: (i, 0)),
            scratch_shapes=[pltpu.VMEM((tm, fp_out), jnp.float32)],
        ),
        compiler_params=pltpu.CompilerParams(
            dimension_semantics=("parallel", "arbitrary"),
            vmem_limit_bytes=_cap_vmem(need)),
        cost_estimate=pl.CostEstimate(
            flops=2 * n_pad * n_pad * fp_out,
            transcendentals=0,
            bytes_accessed=bytes_accessed),
    )(adj, y_rel, y_self)


# ---------------------------------------------------------------------------
# Parameters (lane-padded to multiples of 128; weights bf16 for the MXU)
# ---------------------------------------------------------------------------
def init_graphconv_params(key, in_features, out_features):
    """Deterministic Linear-style init (uniform +-1/sqrt(fan_in)), zero-padded."""
    k_rel, k_root, k_bias = jax.random.split(key, 3)
    bound = 1.0 / jnp.sqrt(jnp.float32(in_features))
    w_rel = jax.random.uniform(k_rel, (in_features, out_features),
                               jnp.float32, -bound, bound)
    w_root = jax.random.uniform(k_root, (in_features, out_features),
                                jnp.float32, -bound, bound)
    b_rel = jax.random.uniform(k_bias, (1, out_features),
                               jnp.float32, -bound, bound)

    fp_in = _round_up(in_features, 128)
    fp_out = _round_up(out_features, 128)
    w_rel_p = jnp.zeros((fp_in, fp_out), jnp.float32).at[
        :in_features, :out_features].set(w_rel).astype(jnp.bfloat16)
    w_root_p = jnp.zeros((fp_in, fp_out), jnp.float32).at[
        :in_features, :out_features].set(w_root).astype(jnp.bfloat16)
    b_p = jnp.zeros((1, fp_out), jnp.float32).at[:, :out_features].set(b_rel)
    return {"w_rel": w_rel_p, "w_root": w_root_p, "b_rel": b_p,
            "in_features": in_features, "out_features": out_features}


def init_node_graph_conv(key, num_features, num_classes, hidden_channels,
                         num_layers):
    dims = [num_features] + [hidden_channels] * (num_layers - 1) + [num_classes]
    keys = jax.random.split(key, num_layers)
    return [init_graphconv_params(keys[i], dims[i], dims[i + 1])
            for i in range(num_layers)]


def edge_index_to_dense_adj(edge_index, num_nodes_padded):
    # A[dst, src] = number of edges src -> dst, built DIRECTLY in int8
    # (no f32 N^2 temporary).  Exact for edge multiplicities <= 127.
    src = edge_index[0]
    dst = edge_index[1]
    adj = jnp.zeros((num_nodes_padded, num_nodes_padded), jnp.int8)
    return adj.at[dst, src].add(jnp.ones(src.shape, jnp.int8))


# ---------------------------------------------------------------------------
# Forward (eval semantics)
# ---------------------------------------------------------------------------
def node_graph_conv_forward(params, x, edge_index, return_node_emb=False,
                            embedding_layer=None):
    n, f_in = x.shape
    n_pad, tm, tk = _choose_tiles(n)
    adj = edge_index_to_dense_adj(edge_index, n_pad)         # [Np, Np] int8

    fp_in = _round_up(f_in, 128)
    h = jnp.zeros((n_pad, fp_in), jnp.float32).at[:n, :f_in].set(x)
    h = h.astype(jnp.bfloat16)

    tm_ft = min(tm, 512)   # feature-transform row tile (cheap relative to aggregation)

    embeddings = []
    num_layers = len(params)
    for i, p in enumerate(params):
        last = (i == num_layers - 1)
        apply_relu = not last
        out_dtype = jnp.float32 if last else jnp.bfloat16
        y_rel, y_self = feature_transform(h, p["w_rel"], p["w_root"],
                                          p["b_rel"], tm=tm_ft)
        h = aggregate(adj, y_rel, y_self, apply_relu=apply_relu,
                      out_dtype=out_dtype, tm=tm, tk=tk)
        if apply_relu:
            embeddings.append(h[:n, :p["out_features"]].astype(jnp.float32))

    out = h[:n, :params[-1]["out_features"]]

    if return_node_emb:
        if embedding_layer is not None:
            if embedding_layer >= len(embeddings):
                raise ValueError(
                    f"embedding_layer {embedding_layer} is too large. "
                    f"Max value is {len(embeddings) - 1}")
            return out, embeddings[embedding_layer]
        return out, embeddings[-1]
    return out


# ---------------------------------------------------------------------------
# Pure-JAX reference (same bf16-quantized weights; f32 activations)
# ---------------------------------------------------------------------------
def _reference_forward(params, x, edge_index, num_nodes):
    src, dst = edge_index[0], edge_index[1]
    adj = jnp.zeros((num_nodes, num_nodes), jnp.float32).at[dst, src].add(1.0)
    h = x.astype(jnp.float32)
    for i, p in enumerate(params):
        fi, fo = p["in_features"], p["out_features"]
        w_rel = p["w_rel"][:fi, :fo].astype(jnp.float32)
        w_root = p["w_root"][:fi, :fo].astype(jnp.float32)
        b = p["b_rel"][:, :fo]
        h = adj @ h @ w_rel + h @ w_root + b
        if i < len(params) - 1:
            h = jax.nn.relu(h)
    return h


if __name__ == "__main__":
    num_nodes = 16
    num_features = 8
    hidden_channels = 32
    num_classes = 4
    num_layers = 3
    num_edges = 40

    key = jax.random.PRNGKey(0)
    k_x, k_src, k_dst, k_params = jax.random.split(key, 4)

    x = jax.random.normal(k_x, (num_nodes, num_features), jnp.float32)
    src = jax.random.randint(k_src, (num_edges,), 0, num_nodes)
    dst = jax.random.randint(k_dst, (num_edges,), 0, num_nodes)
    edge_index = jnp.stack([src, dst], axis=0)  # [2, E]

    params = init_node_graph_conv(k_params, num_features, num_classes,
                                  hidden_channels, num_layers)

    out = node_graph_conv_forward(params, x, edge_index)
    out = jax.block_until_ready(out)
    assert out.shape == (num_nodes, num_classes)

    ref = jax.block_until_ready(_reference_forward(params, x, edge_index, num_nodes))
    assert jnp.allclose(out, ref, atol=5e-2, rtol=5e-2), (
        f"max abs err {jnp.max(jnp.abs(out - ref))}")

    out2, emb = node_graph_conv_forward(params, x, edge_index,
                                        return_node_emb=True, embedding_layer=0)
    jax.block_until_ready((out2, emb))
    assert out2.shape == (num_nodes, num_classes)
    assert emb.shape == (num_nodes, hidden_channels)

    print("KERNEL_OK")
</pallas_src>

<mosaic_0001>
module attributes {stable_mosaic.version = 11 : i64} {
  func.func @feature_transform_kernel(%arg0: i32, %arg1: memref<128x128xbf16, #tpu.memory_space<vmem>>, %arg2: memref<128x128xbf16, #tpu.memory_space<vmem>>, %arg3: memref<128x128xbf16, #tpu.memory_space<vmem>>, %arg4: memref<1x128xf32, #tpu.memory_space<vmem>>, %arg5: memref<128x128xbf16, #tpu.memory_space<vmem>>, %arg6: memref<128x128xf32, #tpu.memory_space<vmem>>) attributes {dimension_semantics = [#tpu.dimension_semantics<parallel>], iteration_bounds = array<i64: 1>, scalar_prefetch = 0 : i64, scratch_operands = 0 : i64, tpu.core_type = #tpu.core_type<tc>, window_params = [{transform_indices = @transform_0, window_bounds = array<i64: 128, 128>}, {pipeline_mode = #tpu.pipeline_mode<synchronous>, transform_indices = @transform_1, window_bounds = array<i64: 128, 128>}, {pipeline_mode = #tpu.pipeline_mode<synchronous>, transform_indices = @transform_2, window_bounds = array<i64: 128, 128>}, {pipeline_mode = #tpu.pipeline_mode<synchronous>, transform_indices = @transform_3, window_bounds = array<i64: 1, 128>}, {transform_indices = @transform_4, window_bounds = array<i64: 128, 128>}, {transform_indices = @transform_5, window_bounds = array<i64: 128, 128>}]} {
    %c0 = arith.constant 0 : index
    %c0_0 = arith.constant 0 : index
    %0 = vector.load %arg1[%c0, %c0_0] : memref<128x128xbf16, #tpu.memory_space<vmem>>, vector<128x128xbf16>
    %c0_1 = arith.constant 0 : index
    %c0_2 = arith.constant 0 : index
    %1 = vector.load %arg2[%c0_1, %c0_2] : memref<128x128xbf16, #tpu.memory_space<vmem>>, vector<128x128xbf16>
    %cst = arith.constant dense<0.000000e+00> : vector<128x128xf32>
    %2 = tpu.matmul %0, %1, %cst {dimension_numbers = #tpu.dot_dimension_numbers<[1], [0], [0], [1], [0, 0, 1, 1], [], []>} : vector<128x128xbf16>, vector<128x128xbf16>, vector<128x128xf32> -> vector<128x128xf32>
    %3 = arith.truncf %2 : vector<128x128xf32> to vector<128x128xbf16>
    %c0_3 = arith.constant 0 : index
    %c0_4 = arith.constant 0 : index
    %4 = vector.load %arg5[%c0_3, %c0_4] : memref<128x128xbf16, #tpu.memory_space<vmem>>, vector<128x128xbf16>
    tpu.vector_store %arg5[%c0_3, %c0_4], %3 {strides = array<i32>} : memref<128x128xbf16, #tpu.memory_space<vmem>>, vector<128x128xbf16>,
    %c0_5 = arith.constant 0 : index
    %c0_6 = arith.constant 0 : index
    %5 = vector.load %arg3[%c0_5, %c0_6] : memref<128x128xbf16, #tpu.memory_space<vmem>>, vector<128x128xbf16>
    %cst_7 = arith.constant dense<0.000000e+00> : vector<128x128xf32>
    %6 = tpu.matmul %0, %5, %cst_7 {dimension_numbers = #tpu.dot_dimension_numbers<[1], [0], [0], [1], [0, 0, 1, 1], [], []>} : vector<128x128xbf16>, vector<128x128xbf16>, vector<128x128xf32> -> vector<128x128xf32>
    %c0_8 = arith.constant 0 : index
    %c0_9 = arith.constant 0 : index
    %7 = vector.load %arg4[%c0_8, %c0_9] : memref<1x128xf32, #tpu.memory_space<vmem>>, vector<1x128xf32>
    %8 = vector.broadcast %7 : vector<1x128xf32> to vector<128x128xf32>
    %9 = arith.addf %6, %8 : vector<128x128xf32>
    %c0_10 = arith.constant 0 : index
    %c0_11 = arith.constant 0 : index
    %10 = vector.load %arg6[%c0_10, %c0_11] : memref<128x128xf32, #tpu.memory_space<vmem>>, vector<128x128xf32>
    tpu.vector_store %arg6[%c0_10, %c0_11], %9 {strides = array<i32>} : memref<128x128xf32, #tpu.memory_space<vmem>>, vector<128x128xf32>,
    return
  }
  func.func @transform_0(%arg0: i32) -> (i32, i32) {
    %c0_i32 = arith.constant 0 : i32
    %c0_i32_0 = arith.constant 0 : i32
    return %arg0, %c0_i32 : i32, i32
  }
  func.func @transform_1(%arg0: i32) -> (i32, i32) {
    %c0_i32 = arith.constant 0 : i32
    %c0_i32_0 = arith.constant 0 : i32
    %c0_i32_1 = arith.constant 0 : i32
    return %c0_i32, %c0_i32_0 : i32, i32
  }
  func.func @transform_2(%arg0: i32) -> (i32, i32) {
    %c0_i32 = arith.constant 0 : i32
    %c0_i32_0 = arith.constant 0 : i32
    %c0_i32_1 = arith.constant 0 : i32
    return %c0_i32, %c0_i32_0 : i32, i32
  }
  func.func @transform_3(%arg0: i32) -> (i32, i32) {
    %c0_i32 = arith.constant 0 : i32
    %c0_i32_0 = arith.constant 0 : i32
    %c0_i32_1 = arith.constant 0 : i32
    return %c0_i32, %c0_i32_0 : i32, i32
  }
  func.func @transform_4(%arg0: i32) -> (i32, i32) {
    %c0_i32 = arith.constant 0 : i32
    %c0_i32_0 = arith.constant 0 : i32
    return %arg0, %c0_i32 : i32, i32
  }
  func.func @transform_5(%arg0: i32) -> (i32, i32) {
    %c0_i32 = arith.constant 0 : i32
    %c0_i32_0 = arith.constant 0 : i32
    return %arg0, %c0_i32 : i32, i32
  }
}

</mosaic_0001>

<bundles_post_ra>
// kernel: tpu_custom_call.1
= control target key start
LH: loop header
LB: loop body
LE: loop exit
PB: predicated region body
PF: predicated region fallthrough
CT: control target
= control target key end

     0   :  { %11 = vsyncpa [#allocation3], 0  ;;  %s1014_s0 = inlined_call_operand.hbm [shape: bf16[128,128], index: 0, kind: input, shape index: {}]   ;;  %s1015_s1 = inlined_call_operand.hbm [shape: bf16[128,128], index: 1, kind: input, shape index: {}]   ;;  %s1016_s2 = inlined_call_operand.hbm [shape: bf16[128,128], index: 2, kind: input, shape index: {}]   ;;  %s1017_s3 = inlined_call_operand.vmem [shape: f32[1,128], index: 3, kind: input, shape index: {}]   ;;  %s1018_s4 = inlined_call_operand.hbm [shape: bf16[128,128], index: 4, kind: output, shape index: {0}]   ;;  %s1019_s5 = inlined_call_operand.hbm [shape: f32[128,128], index: 5, kind: output, shape index: {1}]  }
   0x1   :  { %12 = vsyncpa [#allocation6], 0 }
   0x2   :  { %13 = vsyncpa [#allocation4], 0 }
   0x3   :  { %14 = vsyncpa [#allocation10], 0  ;;  %s927_s18 = smov [#allocation5]   ;;  %s928_s20 = smov [#allocation2]  }
   0x4   :  { %s32_s19 = sshll.u32 %s927_s18, 4  ;;  %s20_s21 = sshll.u32 %s928_s20, 4  ;;  %s33_s19 = int_to_ptr.vmem [resolvable:$true] %s32_s19  ;;  %s21_s21 = int_to_ptr.vmem [resolvable:$true] %s20_s21 }
   0x5   :  { %s827_s22 = scalar_lea.vmem %s33_s19, 1024  ;;  %p832_p1 = scmp.lt.s32.totalorder %s33_s19, %s33_s19 }
   0x6   :  { %p828_p0 = scmp.ne.s32.totalorder %s33_s19, %s827_s22  ;;  %p833_p2 = scmp.lt.s32.totalorder %s827_s22, %s827_s22 }
   0x8   :  { %p834_p3 = por %p833_p2, %p832_p1 }
   0xa   :  { %p835_p4 = pnand %p834_p3, %p828_p0 }
   0xc   :  { %838 = shalt.err (!%p835_p4)
}
   0xd   :  { %s929_s23 = smov 64   ;;  %s930_s24 = smov 4  }
   0xe   :  { %38 = dma.hbm_to_vmem [thread:$0]  %s1015_s1, 1024, %s33_s19, [#allocation6], %s929_s23, %s929_s23, %s930_s24  }
   0xf   :  { %s847_s27 = scalar_lea.vmem %s21_s21, 1024  ;;  %p852_p6 = scmp.lt.s32.totalorder %s21_s21, %s21_s21 }
  0x10   :  { %p848_p5 = scmp.ne.s32.totalorder %s21_s21, %s847_s27  ;;  %p853_p7 = scmp.lt.s32.totalorder %s847_s27, %s847_s27 }
  0x12   :  { %p854_p8 = por %p853_p7, %p852_p6 }
  0x14   :  { %p855_p9 = pnand %p854_p8, %p848_p5 }
  0x16   :  { %858 = shalt.err (!%p855_p9)
}
  0x17   :  { %26 = dma.hbm_to_vmem [thread:$0]  %s1014_s0, 1024, %s21_s21, [#allocation3], %s929_s23, %s929_s23, %s930_s24  }
  0x18   :  { %s931_s30 = smov [#allocation7]  }
  0x19   :  { %s44_s6 = sshll.u32 %s931_s30, 4  ;;  %s45_s6 = int_to_ptr.vmem [resolvable:$true] %s44_s6 }
  0x1a   :  { %s867_s7 = scalar_lea.vmem %s45_s6, 1024  ;;  %p872_p11 = scmp.lt.s32.totalorder %s45_s6, %s45_s6 }
  0x1b   :  { %p868_p10 = scmp.ne.s32.totalorder %s45_s6, %s867_s7  ;;  %p873_p12 = scmp.lt.s32.totalorder %s867_s7, %s867_s7 }
  0x1d   :  { %p874_p13 = por %p873_p12, %p872_p11 }
  0x1f   :  { %p875_p0 = pnand %p874_p13, %p868_p10 }
  0x21   :  { %878 = shalt.err (!%p875_p0)
}
  0x22   :  { %50 = dma.hbm_to_vmem [thread:$0]  %s1016_s2, 1024, %s45_s6, [#allocation6], %s929_s23, %s929_s23, %s930_s24  }
  0x23   :  { %919 = dma.done.wait [#allocation3], 1024  }
  0x24   :  { %920 = vsyncadd [#allocation3], 4294966272 }
  0x25   :  { %921 = dma.done.wait [#allocation6], 2048  }
  0x26   :  { %922 = vsyncadd [#allocation6], 4294965248  ;;  %v795_v0 = vld [vmem:[#allocation5 + $0x38] sm:$0xff]   ;;  %v797_v2 = vld [vmem:[#allocation5 + $0x30] sm:$0xff]   ;;  %s933_s10 = smov [#allocation9]  }
  0x27   :  { %v796_v1 = vld [vmem:[#allocation7 + $0x38] sm:$0xff]   ;;  %722 = vmatprep.subr.bf16.mxu0 %v795_v0  ;;  %v798_v3 = vld [vmem:[#allocation7 + $0x30] sm:$0xff]   ;;  %v799_v4 = vld [vmem:[#allocation5 + $0x28] sm:$0xff]   ;;  %s569_s11 = sshll.u32 %s933_s10, 4  ;;  %s570_s11 = int_to_ptr.vmem [resolvable:$true] %s569_s11 }
  0x28   :  { %754 = vmatprep.subr.bf16.mxu1 %v796_v1  ;;  %723 = vmatpush3.bf16.msra.mxu0 %v795_v0  ;;  %v800_v5 = vld [vmem:[#allocation7 + $0x28] sm:$0xff]   ;;  %v801_v6 = vld [vmem:[#allocation5 + $0x20] sm:$0xff]   ;;  %v803_v8 = vld [vmem:[#allocation5 + $0x18] sm:$0xff]  }
  0x29   :  { %755 = vmatpush3.bf16.msra.mxu1 %v796_v1  ;;  %724 = vmatprep.subr.bf16.mxu0 %v797_v2  ;;  %v802_v7 = vld [vmem:[#allocation7 + $0x20] sm:$0xff]   ;;  %v804_v9 = vld [vmem:[#allocation7 + $0x18] sm:$0xff]   ;;  %v805_v10 = vld [vmem:[#allocation5 + $0x10] sm:$0xff]  }
  0x2a   :  { %756 = vmatprep.subr.bf16.mxu1 %v798_v3  ;;  %v811_v11 = vld [vmem:[#allocation2] sm:$0xff]   ;;  %v806_v12 = vld [vmem:[#allocation7 + $0x10] sm:$0xff]   ;;  %v807_v13 = vld [vmem:[#allocation5 + $0x8] sm:$0xff]  }
  0x2b   :  { %738 = vmatprep.mubr.bf16.mxu0 %v811_v11  ;;  %770 = vmatprep.mubr.bf16.mxu1 %v811_v11  ;;  %v808_v14 = vld [vmem:[#allocation7 + $0x8] sm:$0xff]   ;;  %v809_v15 = vld [vmem:[#allocation5] sm:$0xff]   ;;  %v813_v18 = vld [vmem:[#allocation2 + $0x10] sm:$0xff]  }
  0x2c   :  { %725 = vmatpush3.bf16.msra.mxu0 %v797_v2  ;;  %v810_v16 = vld [vmem:[#allocation7] sm:$0xff]   ;;  %v812_v17 = vld [vmem:[#allocation2 + $0x8] sm:$0xff]   ;;  %v814_v19 = vld [vmem:[#allocation2 + $0x18] sm:$0xff]  }
  0x2d   :  { %757 = vmatpush3.bf16.msra.mxu1 %v798_v3  ;;  %726 = vmatprep.subr.bf16.mxu0 %v799_v4  ;;  %v815_v20 = vld [vmem:[#allocation2 + $0x20] sm:$0xff]   ;;  %v816_v21 = vld [vmem:[#allocation2 + $0x28] sm:$0xff]   ;;  %v817_v22 = vld [vmem:[#allocation2 + $0x30] sm:$0xff]  }
  0x2e   :  { %758 = vmatprep.subr.bf16.mxu1 %v800_v5  ;;  %v818_v23 = vld [vmem:[#allocation2 + $0x38] sm:$0xff]   ;;  %v987_v24 = vld [vmem:[%s1017_s3] ss:$0 sm:$0xff]  ;;  %s932_s3 = smov [#allocation8]  }
  0x2f   :  { %s557_s9 = sshll.u32 %s932_s3, 4  ;;  %s558_s9 = int_to_ptr.vmem [resolvable:$true] %s557_s9 }
  0x30   :  { %727 = vmatpush3.bf16.msra.mxu0 %v799_v4  ;;  %s879_s12 = scalar_lea.vmem %s558_s9, 1024  ;;  %p884_p2 = scmp.lt.s32.totalorder %s558_s9, %s558_s9 }
  0x31   :  { %759 = vmatpush3.bf16.msra.mxu1 %v800_v5  ;;  %728 = vmatprep.subr.bf16.mxu0 %v801_v6  ;;  %p880_p1 = scmp.ne.s32.totalorder %s558_s9, %s879_s12  ;;  %p885_p3 = scmp.lt.s32.totalorder %s879_s12, %s879_s12 }
  0x32   :  { %760 = vmatprep.subr.bf16.mxu1 %v802_v7 }
  0x33   :  { %p886_p4 = por %p885_p3, %p884_p2 }
  0x34   :  { %729 = vmatpush3.bf16.msra.mxu0 %v801_v6 }
  0x35   :  { %761 = vmatpush3.bf16.msra.mxu1 %v802_v7  ;;  %730 = vmatprep.subr.bf16.mxu0 %v803_v8  ;;  %p887_p5 = pnand %p886_p4, %p880_p1 }
  0x36   :  { %762 = vmatprep.subr.bf16.mxu1 %v804_v9 }
  0x38   :  { %731 = vmatpush3.bf16.msra.mxu0 %v803_v8 }
  0x39   :  { %763 = vmatpush3.bf16.msra.mxu1 %v804_v9  ;;  %732 = vmatprep.subr.bf16.mxu0 %v805_v10 }
  0x3a   :  { %764 = vmatprep.subr.bf16.mxu1 %v806_v12 }
  0x3c   :  { %733 = vmatpush3.bf16.msra.mxu0 %v805_v10 }
  0x3d   :  { %765 = vmatpush3.bf16.msra.mxu1 %v806_v12  ;;  %734 = vmatprep.subr.bf16.mxu0 %v807_v13 }
  0x3e   :  { %766 = vmatprep.subr.bf16.mxu1 %v808_v14 }
  0x40   :  { %735 = vmatpush3.bf16.msra.mxu0 %v807_v13 }
  0x41   :  { %767 = vmatpush3.bf16.msra.mxu1 %v808_v14  ;;  %736 = vmatprep.subr.bf16.mxu0 %v809_v15 }
  0x42   :  { %768 = vmatprep.subr.bf16.mxu1 %v810_v16 }
  0x44   :  { %737 = vmatpush3.bf16.msra.mxu0 %v809_v15 }
  0x45   :  { %769 = vmatpush3.bf16.msra.mxu1 %v810_v16 }
  0x47   :  { %739 = vmatmul.mubr.bf16.vlgmr.msra.gmra.mxu0 %v812_v17 }
  0x48   :  { %771 = vmatmul.mubr.bf16.vlgmr.msra.gmra.mxu1 %v812_v17  ;;  %742 = vmatprep.mubr.bf16.mxu0 %v813_v18 }
  0x49   :  { %774 = vmatprep.mubr.bf16.mxu1 %v813_v18 }
  0x4f   :  { %743 = vmatmul.mubr.bf16.gmra.mxu0 %v814_v19 }
  0x50   :  { %775 = vmatmul.mubr.bf16.gmra.mxu1 %v814_v19  ;;  %746 = vmatprep.mubr.bf16.mxu0 %v815_v20 }
  0x51   :  { %778 = vmatprep.mubr.bf16.mxu1 %v815_v20 }
  0x57   :  { %747 = vmatmul.mubr.bf16.gmra.mxu0 %v816_v21 }
  0x58   :  { %779 = vmatmul.mubr.bf16.gmra.mxu1 %v816_v21  ;;  %750 = vmatprep.mubr.bf16.mxu0 %v817_v22 }
  0x59   :  { %782 = vmatprep.mubr.bf16.mxu1 %v817_v22 }
  0x5f   :  { %751 = vmatmul.mubr.bf16.gmra.mxu0 %v818_v23 }
  0x60   :  { %783 = vmatmul.mubr.bf16.gmra.mxu1 %v818_v23 }
 0x107   :  { %v740_v25 = vpop.f32.mrf.mxu0 }
 0x108   :  { %v772_v26 = vpop.f32.mrf.mxu1 }
 0x109   :  { %v482_v27 = vadd.f32 %v772_v26, %v987_v24  ;;  %v225_v28 = vpop.f32.mrf.mxu0 }
 0x10a   :  { %v473_v29 = vpop.f32.mrf.mxu1 }
 0x10b   :  { %538 = vst [vmem:[#allocation9 + $0x10] sm:$0xff] %v482_v27  ;;  %v474_v30 = vadd.f32 %v987_v24, %v473_v29  ;;  %v741_v31 = vpop.f32.mrf.mxu0 }
 0x10c   :  { %v651_v32 = vpack.c.bf16 %v741_v31, %v740_v25  ;;  %v773_v33 = vpop.f32.mrf.mxu1 }
 0x10d   :  { %536 = vst [vmem:[#allocation9] sm:$0xff] %v474_v30  ;;  %v485_v34 = vadd.f32 %v773_v33, %v987_v24  ;;  %v228_v35 = vpop.f32.mrf.mxu0 }
 0x10e   :  { %683 = vst [vmem:[#allocation8 + $0x8] sm:$0xff] %v651_v32   ;;  %v646_v36 = vpack.c.bf16 %v228_v35, %v225_v28  ;;  %v476_v37 = vpop.f32.mrf.mxu1 }
 0x10f   :  { %539 = vst [vmem:[#allocation9 + $0x18] sm:$0xff] %v485_v34  ;;  %v477_v38 = vadd.f32 %v987_v24, %v476_v37  ;;  %v744_v39 = vpop.f32.mrf.mxu0 }
 0x110   :  { %647 = vst [vmem:[#allocation8] sm:$0xff] %v646_v36   ;;  %v776_v40 = vpop.f32.mrf.mxu1 }
 0x111   :  { %537 = vst [vmem:[#allocation9 + $0x8] sm:$0xff] %v477_v38  ;;  %v498_v41 = vadd.f32 %v776_v40, %v987_v24  ;;  %v241_v42 = vpop.f32.mrf.mxu0 }
 0x112   :  { %v489_v43 = vpop.f32.mrf.mxu1 }
 0x113   :  { %542 = vst [vmem:[#allocation9 + $0x30] sm:$0xff] %v498_v41  ;;  %v490_v44 = vadd.f32 %v987_v24, %v489_v43  ;;  %v745_v45 = vpop.f32.mrf.mxu0 }
 0x114   :  { %v661_v46 = vpack.c.bf16 %v745_v45, %v744_v39  ;;  %v777_v47 = vpop.f32.mrf.mxu1 }
 0x115   :  { %540 = vst [vmem:[#allocation9 + $0x20] sm:$0xff] %v490_v44  ;;  %v501_v48 = vadd.f32 %v777_v47, %v987_v24  ;;  %v244_v49 = vpop.f32.mrf.mxu0 }
 0x116   :  { %685 = vst [vmem:[#allocation8 + $0x18] sm:$0xff] %v661_v46   ;;  %v656_v50 = vpack.c.bf16 %v244_v49, %v241_v42  ;;  %v492_v51 = vpop.f32.mrf.mxu1 }
 0x117   :  { %543 = vst [vmem:[#allocation9 + $0x38] sm:$0xff] %v501_v48  ;;  %v493_v52 = vadd.f32 %v987_v24, %v492_v51  ;;  %v748_v53 = vpop.f32.mrf.mxu0 }
 0x118   :  { %684 = vst [vmem:[#allocation8 + $0x10] sm:$0xff] %v656_v50   ;;  %v780_v54 = vpop.f32.mrf.mxu1 }
 0x119   :  { %541 = vst [vmem:[#allocation9 + $0x28] sm:$0xff] %v493_v52  ;;  %v514_v55 = vadd.f32 %v780_v54, %v987_v24  ;;  %v257_v56 = vpop.f32.mrf.mxu0 }
 0x11a   :  { %v505_v57 = vpop.f32.mrf.mxu1 }
 0x11b   :  { %546 = vst [vmem:[#allocation9 + $0x50] sm:$0xff] %v514_v55  ;;  %v506_v58 = vadd.f32 %v987_v24, %v505_v57  ;;  %v749_v59 = vpop.f32.mrf.mxu0 }
 0x11c   :  { %v671_v60 = vpack.c.bf16 %v749_v59, %v748_v53  ;;  %v781_v61 = vpop.f32.mrf.mxu1 }
 0x11d   :  { %544 = vst [vmem:[#allocation9 + $0x40] sm:$0xff] %v506_v58  ;;  %v517_v62 = vadd.f32 %v781_v61, %v987_v24  ;;  %v260_v63 = vpop.f32.mrf.mxu0 }
 0x11e   :  { %687 = vst [vmem:[#allocation8 + $0x28] sm:$0xff] %v671_v60   ;;  %v666_v0 = vpack.c.bf16 %v260_v63, %v257_v56  ;;  %v508_v1 = vpop.f32.mrf.mxu1 }
 0x11f   :  { %547 = vst [vmem:[#allocation9 + $0x58] sm:$0xff] %v517_v62  ;;  %v509_v2 = vadd.f32 %v987_v24, %v508_v1  ;;  %v752_v3 = vpop.f32.mrf.mxu0 }
 0x120   :  { %686 = vst [vmem:[#allocation8 + $0x20] sm:$0xff] %v666_v0   ;;  %v784_v4 = vpop.f32.mrf.mxu1 }
 0x121   :  { %545 = vst [vmem:[#allocation9 + $0x48] sm:$0xff] %v509_v2  ;;  %v530_v5 = vadd.f32 %v784_v4, %v987_v24  ;;  %v273_v6 = vpop.f32.mrf.mxu0 }
 0x122   :  { %v521_v7 = vpop.f32.mrf.mxu1 }
 0x123   :  { %550 = vst [vmem:[#allocation9 + $0x70] sm:$0xff] %v530_v5  ;;  %v522_v8 = vadd.f32 %v987_v24, %v521_v7  ;;  %v753_v9 = vpop.f32.mrf.mxu0 }
 0x124   :  { %v681_v10 = vpack.c.bf16 %v753_v9, %v752_v3  ;;  %v785_v11 = vpop.f32.mrf.mxu1 }
 0x125   :  { %548 = vst [vmem:[#allocation9 + $0x60] sm:$0xff] %v522_v8  ;;  %v533_v12 = vadd.f32 %v785_v11, %v987_v24  ;;  %v276_v13 = vpop.f32.mrf.mxu0 }
 0x126   :  { %689 = vst [vmem:[#allocation8 + $0x38] sm:$0xff] %v681_v10   ;;  %v676_v14 = vpack.c.bf16 %v276_v13, %v273_v6  ;;  %v524_v15 = vpop.f32.mrf.mxu1 }
 0x127   :  { %551 = vst [vmem:[#allocation9 + $0x78] sm:$0xff] %v533_v12  ;;  %v525_v16 = vadd.f32 %v987_v24, %v524_v15 }
 0x128   :  { %688 = vst [vmem:[#allocation8 + $0x30] sm:$0xff] %v676_v14  }
 0x129   :  { %549 = vst [vmem:[#allocation9 + $0x68] sm:$0xff] %v525_v16 }
 0x12a   :  { %890 = shalt.err (!%p887_p5)
}
 0x12b   :  { %563 = dma.vmem_to_hbm [thread:$0]  %s558_s9, 1024, %s1018_s4, [#allocation4], %s929_s23, %s929_s23, %s930_s24  }
 0x12c   :  { %s899_s15 = scalar_lea.vmem %s570_s11, 2048  ;;  %p904_p7 = scmp.lt.s32.totalorder %s570_s11, %s570_s11 }
 0x12d   :  { %p900_p6 = scmp.ne.s32.totalorder %s570_s11, %s899_s15  ;;  %p905_p8 = scmp.lt.s32.totalorder %s899_s15, %s899_s15 }
 0x12f   :  { %p906_p9 = por %p905_p8, %p904_p7 }
 0x131   :  { %p907_p10 = pnand %p906_p9, %p900_p6 }
 0x133   :  { %910 = shalt.err (!%p907_p10)
}
 0x134   :  { %s934_s16 = smov 128   ;;  %s935_s17 = smov 8  }
 0x135   :  { %575 = dma.vmem_to_hbm [thread:$0]  %s570_s11, 2048, %s1019_s5, [#allocation10], %s934_s16, %s934_s16, %s935_s17  }
 0x136   :  { %923 = dma.done.wait [#allocation4], 1024  }
 0x137   :  { %924 = vsyncadd [#allocation4], 4294966272 }
 0x138   :  { %925 = dma.done.wait [#allocation10], 2048  }
 0x139   :  { %926 = vsyncadd [#allocation10], 4294965248 }
 0x13a   :  { %582 = vsyncpa [#allocation3], 1 }
 0x13b   :  { %583 = vsyncpa [#allocation6], 1 }
 0x13c   :  { %584 = vsyncpa [#allocation4], 1 }
 0x13d   :  { %585 = vsyncpa [#allocation10], 1 }

</bundles_post_ra>
